<compile_context>
chip_gen: v7x
topology: tpu7x:2x2x1
jax: 0.10.0
libtpu: 0.0.40
codegen_flags: <defaults>
</compile_context>

<pallas_src>
import functools

import jax
import jax.numpy as jnp
from jax.experimental import pallas as pl
from jax.experimental.pallas import tpu as pltpu


def _round_up(v, m):
    return (v + m - 1) // m * m


def _pick_tile(n, prefer):
    for t in (prefer, 1024, 512, 256, 128):
        if t <= n and n % t == 0:
            return t
    return n


def _pad2d(a, rows, cols):
    return jnp.pad(a, ((0, rows - a.shape[0]), (0, cols - a.shape[1])))


# ------------------------------------------------------------------ GIN layer

def _gin_layer_kernel(a_ref, h_ref, w1_ref, b1_ref, w2_ref, b2_ref, o_ref,
                      acc_ref, *, tk):
    k = pl.program_id(1)

    @pl.when(k == 0)
    def _():
        acc_ref[...] = jnp.zeros_like(acc_ref)

    # GIN aggregation (self loop already folded into A'): acc += A'_tile @ h_slice.
    # A' arrives as int8 counts, h as bf16; both are widened to f32 on the VPU
    # so the dot is f32 x f32 (no int/bf16 MXU dependence, works everywhere).
    a_tile = a_ref[...].astype(jnp.float32)
    h_start = pl.multiple_of(k * tk, 128)
    h_tile = h_ref[pl.ds(h_start, tk), :].astype(jnp.float32)
    acc_ref[...] += jnp.dot(a_tile, h_tile, preferred_element_type=jnp.float32)

    @pl.when(k == pl.num_programs(1) - 1)
    def _():
        # MLP: Linear -> ReLU -> Linear, then the outer F.relu from forward().
        # Keep the aggregated activations in f32 through the epilogue.
        agg = acc_ref[...]
        h1 = jnp.dot(agg, w1_ref[...], preferred_element_type=jnp.float32) + b1_ref[...]
        h1 = jnp.maximum(h1, 0.0)
        h2 = jnp.dot(h1, w2_ref[...], preferred_element_type=jnp.float32) + b2_ref[...]
        o_ref[...] = jnp.maximum(h2, 0.0).astype(o_ref.dtype)


def gin_layer(a, h, w1, b1, w2, b2):
    n_pad = a.shape[0]
    din_pad = h.shape[1]
    dh_pad = w1.shape[1]
    tm = _pick_tile(n_pad, 512)
    tk = _pick_tile(n_pad, 1024)
    grid = (n_pad // tm, n_pad // tk)

    flops = (2 * n_pad * n_pad * din_pad
             + 2 * n_pad * din_pad * dh_pad
             + 2 * n_pad * dh_pad * dh_pad)
    bytes_accessed = (n_pad * n_pad * 1            # A' (int8), streamed once
                      + n_pad * din_pad * 2        # h (bf16), resident -> read once
                      + din_pad * dh_pad * 4       # W1 (f32, resident)
                      + dh_pad * dh_pad * 4        # W2 (f32, resident)
                      + 2 * dh_pad * 4             # biases (f32)
                      + n_pad * dh_pad * 2)        # output (bf16)

    # Explicit VMEM budget: double-buffered A tile + resident h (Pallas keeps
    # two buffers) + weights + f32 accumulator + double-buffered output tile,
    # with headroom.  Capped at 64 MiB so the same sizing fits a v7x TC.
    vmem_need = (2 * tm * tk * 1
                 + 2 * n_pad * din_pad * 2
                 + din_pad * dh_pad * 4 + dh_pad * dh_pad * 4 + 2 * dh_pad * 4
                 + tm * din_pad * 4
                 + 2 * tm * dh_pad * 2)
    vmem_limit = min(int(1.5 * vmem_need) + (4 << 20), 64 << 20)

    kernel = functools.partial(_gin_layer_kernel, tk=tk)
    return pl.pallas_call(
        kernel,
        out_shape=jax.ShapeDtypeStruct((n_pad, dh_pad), jnp.bfloat16),
        grid_spec=pltpu.PrefetchScalarGridSpec(
            num_scalar_prefetch=0,
            grid=grid,
            in_specs=[
                pl.BlockSpec((tm, tk), lambda i, k: (i, k)),             # A' tile (int8)
                pl.BlockSpec((n_pad, din_pad), lambda i, k: (0, 0)),     # h (resident)
                pl.BlockSpec((din_pad, dh_pad), lambda i, k: (0, 0)),    # W1 (resident)
                pl.BlockSpec((1, dh_pad), lambda i, k: (0, 0)),          # b1
                pl.BlockSpec((dh_pad, dh_pad), lambda i, k: (0, 0)),     # W2 (resident)
                pl.BlockSpec((1, dh_pad), lambda i, k: (0, 0)),          # b2
            ],
            out_specs=pl.BlockSpec((tm, dh_pad), lambda i, k: (i, 0)),
            scratch_shapes=[pltpu.VMEM((tm, din_pad), jnp.float32)],
        ),
        compiler_params=pltpu.CompilerParams(
            dimension_semantics=("parallel", "arbitrary"),
            vmem_limit_bytes=vmem_limit),
        cost_estimate=pl.CostEstimate(
            flops=flops, transcendentals=0, bytes_accessed=bytes_accessed),
    )(a, h, w1, b1, w2, b2)


# ------------------------------------------------------------ global_add_pool

def _pool_kernel(p_ref, h_ref, o_ref, acc_ref):
    k = pl.program_id(0)

    @pl.when(k == 0)
    def _():
        acc_ref[...] = jnp.zeros_like(acc_ref)

    acc_ref[...] += jnp.dot(p_ref[...], h_ref[...].astype(jnp.float32),
                            preferred_element_type=jnp.float32)

    @pl.when(k == pl.num_programs(0) - 1)
    def _():
        o_ref[...] = acc_ref[...]


def global_add_pool_pallas(p, h):
    g_pad, n_pad = p.shape
    dh_pad = h.shape[1]
    tk = _pick_tile(n_pad, 1024)
    return pl.pallas_call(
        _pool_kernel,
        out_shape=jax.ShapeDtypeStruct((g_pad, dh_pad), jnp.float32),
        grid_spec=pltpu.PrefetchScalarGridSpec(
            num_scalar_prefetch=0,
            grid=(n_pad // tk,),
            in_specs=[
                pl.BlockSpec((g_pad, tk), lambda k: (0, k)),     # pooling matrix (f32)
                pl.BlockSpec((tk, dh_pad), lambda k: (k, 0)),    # node features (bf16)
            ],
            out_specs=pl.BlockSpec((g_pad, dh_pad), lambda k: (0, 0)),
            scratch_shapes=[pltpu.VMEM((g_pad, dh_pad), jnp.float32)],
        ),
        compiler_params=pltpu.CompilerParams(
            dimension_semantics=("arbitrary",)),
    )(p, h)


# ------------------------------------------------------------------- wrapper

def init_params(key, in_channels, hidden_channels, num_layers):
    """Deterministic synthetic parameters matching nn.Linear shapes."""
    params = []
    for layer in range(num_layers):
        dim_in = in_channels if layer == 0 else hidden_channels
        key, k1, k2, k3, k4 = jax.random.split(key, 5)
        bound1 = 1.0 / float(dim_in) ** 0.5
        bound2 = 1.0 / float(hidden_channels) ** 0.5
        w1 = jax.random.uniform(k1, (dim_in, hidden_channels), jnp.float32, -bound1, bound1)
        b1 = jax.random.uniform(k2, (1, hidden_channels), jnp.float32, -bound1, bound1)
        w2 = jax.random.uniform(k3, (hidden_channels, hidden_channels), jnp.float32, -bound2, bound2)
        b2 = jax.random.uniform(k4, (1, hidden_channels), jnp.float32, -bound2, bound2)
        params.append((w1, b1, w2, b2))
    return params


@functools.partial(jax.jit, static_argnames=("num_graphs",))
def multi_layer_gin(x, edge_index, batch, params, *, num_graphs):
    n, c = x.shape
    hidden = params[-1][2].shape[1]

    n_pad = _round_up(n, 128)
    c_pad = _round_up(c, 128)
    g_pad = _round_up(num_graphs, 8)

    # glue (plain JAX): dense adjacency A'[dst, src] += 1 with the eps=0 self
    # term folded in (A + I), built directly as small-int counts and stored as
    # int8 (assumes edge multiplicity + self-loop <= 127 per entry).
    src, dst = edge_index[0], edge_index[1]
    a = jnp.zeros((n_pad, n_pad), jnp.int32)
    a = a.at[dst, src].add(1)
    a = a.at[jnp.arange(n), jnp.arange(n)].add(1)
    a = a.astype(jnp.int8)

    # zero-pad node features to a lane-dense (N_pad, C_pad) bf16 slab.
    h = jnp.zeros((n_pad, c_pad), jnp.float32).at[:n, :c].set(x).astype(jnp.bfloat16)

    for (w1, b1, w2, b2) in params:
        din, dout = w1.shape
        din_p, dout_p = _round_up(din, 128), _round_up(dout, 128)
        w1p = _pad2d(w1, din_p, dout_p)       # f32 (small, resident)
        b1p = _pad2d(b1, 1, dout_p)           # f32 bias
        w2p = _pad2d(w2, dout_p, dout_p)      # f32 (small, resident)
        b2p = _pad2d(b2, 1, dout_p)           # f32 bias
        h = gin_layer(a, h, w1p, b1p, w2p, b2p)

    # glue (plain JAX): one-hot pooling matrix (G_pad, N_pad) in f32 (bf16
    # would under-pack the 8-row sublane block); padded nodes get batch id -1
    # -> all-zero one-hot column -> no contribution to any graph.
    batch_pad = jnp.full((n_pad,), -1, jnp.int32).at[:n].set(batch)
    p = jax.nn.one_hot(batch_pad, g_pad, dtype=jnp.float32).T

    pooled = global_add_pool_pallas(p, h)
    return pooled[:num_graphs, :hidden]


def reference(x, edge_index, batch, params, num_graphs):
    """Pure-JAX fp32 reference matching PyG GINConv (eps=0) + F.relu + global_add_pool."""
    n = x.shape[0]
    a = jnp.zeros((n, n), jnp.float32).at[edge_index[1], edge_index[0]].add(1.0)
    h = x
    for (w1, b1, w2, b2) in params:
        agg = a @ h + h
        h = jnp.maximum(agg @ w1 + b1, 0.0)
        h = jnp.maximum(h @ w2 + b2, 0.0)
    p = jax.nn.one_hot(batch, num_graphs, dtype=jnp.float32).T
    return p @ h


if __name__ == "__main__":
    in_channels, hidden_channels, num_layers = 4, 32, 3
    n_nodes, n_graphs = 16, 2
    nodes_per_graph = n_nodes // n_graphs
    edges_per_graph = 12

    key = jax.random.PRNGKey(0)
    kx, ke, kp = jax.random.split(key, 3)

    x = jax.random.normal(kx, (n_nodes, in_channels), jnp.float32)
    batch = jnp.repeat(jnp.arange(n_graphs, dtype=jnp.int32), nodes_per_graph)

    # random directed edges, confined to each graph
    edge_chunks = []
    for g in range(n_graphs):
        kg = jax.random.fold_in(ke, g)
        s = jax.random.randint(jax.random.fold_in(kg, 0), (edges_per_graph,), 0, nodes_per_graph)
        d = jax.random.randint(jax.random.fold_in(kg, 1), (edges_per_graph,), 0, nodes_per_graph)
        edge_chunks.append(jnp.stack([s + g * nodes_per_graph, d + g * nodes_per_graph]))
    edge_index = jnp.concatenate(edge_chunks, axis=1).astype(jnp.int32)

    params = init_params(kp, in_channels, hidden_channels, num_layers)

    out = multi_layer_gin(x, edge_index, batch, params, num_graphs=n_graphs)
    out = jax.block_until_ready(out)

    ref = reference(x, edge_index, batch, params, n_graphs)
    assert out.shape == (n_graphs, hidden_channels), out.shape
    # Only error source is bf16 storage of activations between layers
    # (aggregation + MLP run in f32); tolerance stays comfortably loose.
    err = float(jnp.max(jnp.abs(out - ref)))
    scale = float(jnp.max(jnp.abs(ref)))
    assert err <= 5e-2 * scale + 5e-2, (err, scale)
    print("KERNEL_OK")
</pallas_src>

<mosaic_0001>
module attributes {stable_mosaic.version = 11 : i64} {
  func.func private @main(%arg0: i32) attributes {dimension_semantics = [#tpu.dimension_semantics<core_parallel>], iteration_bounds = array<i64: 2>, tpu.core_type = #tpu.core_type<sc_scalar_subcore>, window_params = []} {
    return
  }
}

module attributes {stable_mosaic.version = 11 : i64} {
  func.func private @main(%arg0: i32) attributes {dimension_semantics = [#tpu.dimension_semantics<core_parallel>], iteration_bounds = array<i64: 2>, tpu.core_type = #tpu.core_type<sc_scalar_subcore>, window_params = []} {
    return
  }
}

module attributes {stable_mosaic.version = 11 : i64} {
  func.func @_pool_kernel(%arg0: i32, %arg1: memref<8x128xf32, #tpu.memory_space<vmem>>, %arg2: memref<128x128xbf16, #tpu.memory_space<vmem>>, %arg3: memref<8x128xf32, #tpu.memory_space<vmem>>, %arg4: memref<8x128xf32, #tpu.memory_space<vmem>>) attributes {dimension_semantics = [#tpu.dimension_semantics<arbitrary>], iteration_bounds = array<i64: 1>, scalar_prefetch = 0 : i64, scratch_operands = 1 : i64, tpu.core_type = #tpu.core_type<tc>, window_params = [{transform_indices = @transform_0, window_bounds = array<i64: 8, 128>}, {transform_indices = @transform_1, window_bounds = array<i64: 128, 128>}, {pipeline_mode = #tpu.pipeline_mode<synchronous>, transform_indices = @transform_2, window_bounds = array<i64: 8, 128>}]} {
    %c0_i32 = arith.constant 0 : i32
    %0 = arith.cmpi eq, %arg0, %c0_i32 : i32
    %1 = arith.extui %0 : i1 to i32
    %c0_i32_0 = arith.constant 0 : i32
    %2 = arith.cmpi ne, %1, %c0_i32_0 : i32
    scf.if %2 {
      %cst_10 = arith.constant 0.000000e+00 : f32
      %13 = vector.broadcast %cst_10 : f32 to vector<8x128xf32>
      %c0_11 = arith.constant 0 : index
      %c0_12 = arith.constant 0 : index
      %14 = vector.load %arg4[%c0_11, %c0_12] : memref<8x128xf32, #tpu.memory_space<vmem>>, vector<8x128xf32>
      tpu.vector_store %arg4[%c0_11, %c0_12], %13 {strides = array<i32>} : memref<8x128xf32, #tpu.memory_space<vmem>>, vector<8x128xf32>,
    } else {
    }
    %c0 = arith.constant 0 : index
    %c0_1 = arith.constant 0 : index
    %3 = vector.load %arg4[%c0, %c0_1] : memref<8x128xf32, #tpu.memory_space<vmem>>, vector<8x128xf32>
    %c0_2 = arith.constant 0 : index
    %c0_3 = arith.constant 0 : index
    %4 = vector.load %arg1[%c0_2, %c0_3] : memref<8x128xf32, #tpu.memory_space<vmem>>, vector<8x128xf32>
    %c0_4 = arith.constant 0 : index
    %c0_5 = arith.constant 0 : index
    %5 = vector.load %arg2[%c0_4, %c0_5] : memref<128x128xbf16, #tpu.memory_space<vmem>>, vector<128x128xbf16>
    %6 = arith.extf %5 : vector<128x128xbf16> to vector<128x128xf32>
    %cst = arith.constant dense<0.000000e+00> : vector<8x128xf32>
    %7 = tpu.matmul %4, %6, %cst {dimension_numbers = #tpu.dot_dimension_numbers<[1], [0], [0], [1], [0, 0, 1, 1], [], []>} : vector<8x128xf32>, vector<128x128xf32>, vector<8x128xf32> -> vector<8x128xf32>
    %8 = arith.addf %3, %7 : vector<8x128xf32>
    %c0_6 = arith.constant 0 : index
    %c0_7 = arith.constant 0 : index
    %9 = vector.load %arg4[%c0_6, %c0_7] : memref<8x128xf32, #tpu.memory_space<vmem>>, vector<8x128xf32>
    tpu.vector_store %arg4[%c0_6, %c0_7], %8 {strides = array<i32>} : memref<8x128xf32, #tpu.memory_space<vmem>>, vector<8x128xf32>,
    %c0_i32_8 = arith.constant 0 : i32
    %10 = arith.cmpi eq, %arg0, %c0_i32_8 : i32
    %11 = arith.extui %10 : i1 to i32
    %c0_i32_9 = arith.constant 0 : i32
    %12 = arith.cmpi ne, %11, %c0_i32_9 : i32
    scf.if %12 {
      %c0_10 = arith.constant 0 : index
      %c0_11 = arith.constant 0 : index
      %13 = vector.load %arg4[%c0_10, %c0_11] : memref<8x128xf32, #tpu.memory_space<vmem>>, vector<8x128xf32>
      %c0_12 = arith.constant 0 : index
      %c0_13 = arith.constant 0 : index
      %14 = vector.load %arg3[%c0_12, %c0_13] : memref<8x128xf32, #tpu.memory_space<vmem>>, vector<8x128xf32>
      tpu.vector_store %arg3[%c0_12, %c0_13], %13 {strides = array<i32>} : memref<8x128xf32, #tpu.memory_space<vmem>>, vector<8x128xf32>,
    } else {
    }
    return
  }
  func.func @transform_0(%arg0: i32) -> (i32, i32) {
    %c0_i32 = arith.constant 0 : i32
    %c0_i32_0 = arith.constant 0 : i32
    return %c0_i32, %arg0 : i32, i32
  }
  func.func @transform_1(%arg0: i32) -> (i32, i32) {
    %c0_i32 = arith.constant 0 : i32
    %c0_i32_0 = arith.constant 0 : i32
    return %arg0, %c0_i32 : i32, i32
  }
  func.func @transform_2(%arg0: i32) -> (i32, i32) {
    %c0_i32 = arith.constant 0 : i32
    %c0_i32_0 = arith.constant 0 : i32
    %c0_i32_1 = arith.constant 0 : i32
    return %c0_i32, %c0_i32_0 : i32, i32
  }
}

module attributes {stable_mosaic.version = 11 : i64} {
  func.func @_gin_layer_kernel(%arg0: i32, %arg1: i32, %arg2: memref<128x128xi8, #tpu.memory_space<vmem>>, %arg3: memref<128x128xbf16, #tpu.memory_space<vmem>>, %arg4: memref<128x128xf32, #tpu.memory_space<vmem>>, %arg5: memref<1x128xf32, #tpu.memory_space<vmem>>, %arg6: memref<128x128xf32, #tpu.memory_space<vmem>>, %arg7: memref<1x128xf32, #tpu.memory_space<vmem>>, %arg8: memref<128x128xbf16, #tpu.memory_space<vmem>>, %arg9: memref<128x128xf32, #tpu.memory_space<vmem>>) attributes {dimension_semantics = [#tpu.dimension_semantics<parallel>, #tpu.dimension_semantics<arbitrary>], iteration_bounds = array<i64: 1, 1>, scalar_prefetch = 0 : i64, scratch_operands = 1 : i64, tpu.core_type = #tpu.core_type<tc>, window_params = [{transform_indices = @transform_0, window_bounds = array<i64: 128, 128>}, {pipeline_mode = #tpu.pipeline_mode<synchronous>, transform_indices = @transform_1, window_bounds = array<i64: 128, 128>}, {pipeline_mode = #tpu.pipeline_mode<synchronous>, transform_indices = @transform_2, window_bounds = array<i64: 128, 128>}, {pipeline_mode = #tpu.pipeline_mode<synchronous>, transform_indices = @transform_3, window_bounds = array<i64: 1, 128>}, {pipeline_mode = #tpu.pipeline_mode<synchronous>, transform_indices = @transform_4, window_bounds = array<i64: 128, 128>}, {pipeline_mode = #tpu.pipeline_mode<synchronous>, transform_indices = @transform_5, window_bounds = array<i64: 1, 128>}, {transform_indices = @transform_6, window_bounds = array<i64: 128, 128>}]} {
    %c0_i32 = arith.constant 0 : i32
    %0 = arith.cmpi eq, %arg1, %c0_i32 : i32
    %1 = arith.extui %0 : i1 to i32
    %c0_i32_0 = arith.constant 0 : i32
    %2 = arith.cmpi ne, %1, %c0_i32_0 : i32
    scf.if %2 {
      %cst_9 = arith.constant 0.000000e+00 : f32
      %17 = vector.broadcast %cst_9 : f32 to vector<128x128xf32>
      %c0_10 = arith.constant 0 : index
      %c0_11 = arith.constant 0 : index
      %18 = vector.load %arg9[%c0_10, %c0_11] : memref<128x128xf32, #tpu.memory_space<vmem>>, vector<128x128xf32>
      tpu.vector_store %arg9[%c0_10, %c0_11], %17 {strides = array<i32>} : memref<128x128xf32, #tpu.memory_space<vmem>>, vector<128x128xf32>,
    } else {
    }
    %c0 = arith.constant 0 : index
    %c0_1 = arith.constant 0 : index
    %3 = vector.load %arg2[%c0, %c0_1] : memref<128x128xi8, #tpu.memory_space<vmem>>, vector<128x128xi8>
    %4 = arith.sitofp %3 : vector<128x128xi8> to vector<128x128xf32>
    %c128_i32 = arith.constant 128 : i32
    %5 = arith.muli %arg1, %c128_i32 : i32
    %6 = tpu.assume_multiple %5, 128 : i32
    %7 = arith.index_cast %6 : i32 to index
    %c0_2 = arith.constant 0 : index
    %8 = vector.load %arg3[%7, %c0_2] : memref<128x128xbf16, #tpu.memory_space<vmem>>, vector<128x128xbf16>
    %9 = arith.extf %8 : vector<128x128xbf16> to vector<128x128xf32>
    %c0_3 = arith.constant 0 : index
    %c0_4 = arith.constant 0 : index
    %10 = vector.load %arg9[%c0_3, %c0_4] : memref<128x128xf32, #tpu.memory_space<vmem>>, vector<128x128xf32>
    %cst = arith.constant dense<0.000000e+00> : vector<128x128xf32>
    %11 = tpu.matmul %4, %9, %cst {dimension_numbers = #tpu.dot_dimension_numbers<[1], [0], [0], [1], [0, 0, 1, 1], [], []>} : vector<128x128xf32>, vector<128x128xf32>, vector<128x128xf32> -> vector<128x128xf32>
    %12 = arith.addf %10, %11 : vector<128x128xf32>
    %c0_5 = arith.constant 0 : index
    %c0_6 = arith.constant 0 : index
    %13 = vector.load %arg9[%c0_5, %c0_6] : memref<128x128xf32, #tpu.memory_space<vmem>>, vector<128x128xf32>
    tpu.vector_store %arg9[%c0_5, %c0_6], %12 {strides = array<i32>} : memref<128x128xf32, #tpu.memory_space<vmem>>, vector<128x128xf32>,
    %c0_i32_7 = arith.constant 0 : i32
    %14 = arith.cmpi eq, %arg1, %c0_i32_7 : i32
    %15 = arith.extui %14 : i1 to i32
    %c0_i32_8 = arith.constant 0 : i32
    %16 = arith.cmpi ne, %15, %c0_i32_8 : i32
    scf.if %16 {
      %c0_9 = arith.constant 0 : index
      %c0_10 = arith.constant 0 : index
      %17 = vector.load %arg9[%c0_9, %c0_10] : memref<128x128xf32, #tpu.memory_space<vmem>>, vector<128x128xf32>
      %c0_11 = arith.constant 0 : index
      %c0_12 = arith.constant 0 : index
      %18 = vector.load %arg4[%c0_11, %c0_12] : memref<128x128xf32, #tpu.memory_space<vmem>>, vector<128x128xf32>
      %cst_13 = arith.constant dense<0.000000e+00> : vector<128x128xf32>
      %19 = tpu.matmul %17, %18, %cst_13 {dimension_numbers = #tpu.dot_dimension_numbers<[1], [0], [0], [1], [0, 0, 1, 1], [], []>} : vector<128x128xf32>, vector<128x128xf32>, vector<128x128xf32> -> vector<128x128xf32>
      %c0_14 = arith.constant 0 : index
      %c0_15 = arith.constant 0 : index
      %20 = vector.load %arg5[%c0_14, %c0_15] : memref<1x128xf32, #tpu.memory_space<vmem>>, vector<1x128xf32>
      %21 = vector.broadcast %20 : vector<1x128xf32> to vector<128x128xf32>
      %22 = arith.addf %19, %21 : vector<128x128xf32>
      %cst_16 = arith.constant 0.000000e+00 : f32
      %23 = vector.broadcast %cst_16 : f32 to vector<128x128xf32>
      %24 = arith.maximumf %22, %23 : vector<128x128xf32>
      %c0_17 = arith.constant 0 : index
      %c0_18 = arith.constant 0 : index
      %25 = vector.load %arg6[%c0_17, %c0_18] : memref<128x128xf32, #tpu.memory_space<vmem>>, vector<128x128xf32>
      %cst_19 = arith.constant dense<0.000000e+00> : vector<128x128xf32>
      %26 = tpu.matmul %24, %25, %cst_19 {dimension_numbers = #tpu.dot_dimension_numbers<[1], [0], [0], [1], [0, 0, 1, 1], [], []>} : vector<128x128xf32>, vector<128x128xf32>, vector<128x128xf32> -> vector<128x128xf32>
      %c0_20 = arith.constant 0 : index
      %c0_21 = arith.constant 0 : index
      %27 = vector.load %arg7[%c0_20, %c0_21] : memref<1x128xf32, #tpu.memory_space<vmem>>, vector<1x128xf32>
      %28 = vector.broadcast %27 : vector<1x128xf32> to vector<128x128xf32>
      %29 = arith.addf %26, %28 : vector<128x128xf32>
      %cst_22 = arith.constant 0.000000e+00 : f32
      %30 = vector.broadcast %cst_22 : f32 to vector<128x128xf32>
      %31 = arith.maximumf %29, %30 : vector<128x128xf32>
      %32 = arith.truncf %31 : vector<128x128xf32> to vector<128x128xbf16>
      %c0_23 = arith.constant 0 : index
      %c0_24 = arith.constant 0 : index
      %33 = vector.load %arg8[%c0_23, %c0_24] : memref<128x128xbf16, #tpu.memory_space<vmem>>, vector<128x128xbf16>
      tpu.vector_store %arg8[%c0_23, %c0_24], %32 {strides = array<i32>} : memref<128x128xbf16, #tpu.memory_space<vmem>>, vector<128x128xbf16>,
    } else {
    }
    return
  }
  func.func @transform_0(%arg0: i32, %arg1: i32) -> (i32, i32) {
    %c0_i32 = arith.constant 0 : i32
    return %arg0, %arg1 : i32, i32
  }
  func.func @transform_1(%arg0: i32, %arg1: i32) -> (i32, i32) {
    %c0_i32 = arith.constant 0 : i32
    %c0_i32_0 = arith.constant 0 : i32
    %c0_i32_1 = arith.constant 0 : i32
    return %c0_i32, %c0_i32_0 : i32, i32
  }
  func.func @transform_2(%arg0: i32, %arg1: i32) -> (i32, i32) {
    %c0_i32 = arith.constant 0 : i32
    %c0_i32_0 = arith.constant 0 : i32
    %c0_i32_1 = arith.constant 0 : i32
    return %c0_i32, %c0_i32_0 : i32, i32
  }
  func.func @transform_3(%arg0: i32, %arg1: i32) -> (i32, i32) {
    %c0_i32 = arith.constant 0 : i32
    %c0_i32_0 = arith.constant 0 : i32
    %c0_i32_1 = arith.constant 0 : i32
    return %c0_i32, %c0_i32_0 : i32, i32
  }
  func.func @transform_4(%arg0: i32, %arg1: i32) -> (i32, i32) {
    %c0_i32 = arith.constant 0 : i32
    %c0_i32_0 = arith.constant 0 : i32
    %c0_i32_1 = arith.constant 0 : i32
    return %c0_i32, %c0_i32_0 : i32, i32
  }
  func.func @transform_5(%arg0: i32, %arg1: i32) -> (i32, i32) {
    %c0_i32 = arith.constant 0 : i32
    %c0_i32_0 = arith.constant 0 : i32
    %c0_i32_1 = arith.constant 0 : i32
    return %c0_i32, %c0_i32_0 : i32, i32
  }
  func.func @transform_6(%arg0: i32, %arg1: i32) -> (i32, i32) {
    %c0_i32 = arith.constant 0 : i32
    %c0_i32_0 = arith.constant 0 : i32
    return %arg0, %c0_i32 : i32, i32
  }
}

</mosaic_0001>

<bundles_post_ra>
// kernel: multi_layer_gin.7
= control target key start
LH: loop header
LB: loop body
LE: loop exit
PB: predicated region body
PF: predicated region fallthrough
CT: control target
= control target key end

     0   :  { %v249_v0 = vmov 0.0|0.0   ;;  %vm250_vm0 = vmmov 0   ;;  %v251_v2 = vmov 0.0   ;;  %s297_s1 = inlined_call_operand.vmem [shape: bf16[128,128], index: 1, kind: input, shape index: {}]   ;;  %s298_s0 = inlined_call_operand.vmem [shape: f32[8,128], index: 0, kind: input, shape index: {}]   ;;  %s299_s2 = inlined_call_operand.vmem [shape: f32[8,128], index: 2, kind: output, shape index: {}]  }
   0x1   :  { %222 = vmatprep.subr.bf16.mxu0 %v249_v0  ;;  %v132_v1 = vld [vmem:[%s297_s1] sm:$0xff]   ;;  %219 = vmatprep.mubr.msk.f32.mxu0 %vm250_vm0, %v251_v2  ;;  %v163_v3 = vld [vmem:[%s297_s1 + $0x8] sm:$0xff]   ;;  %v164_v4 = vld [vmem:[%s297_s1 + $0x10] sm:$0xff]  }
   0x2   :  { %224 = vmatpush3.bf16.msra.mxu0 %v132_v1  ;;  %v165_v5 = vld [vmem:[%s297_s1 + $0x18] sm:$0xff]   ;;  %v166_v6 = vld [vmem:[%s297_s1 + $0x20] sm:$0xff]   ;;  %v167_v7 = vld [vmem:[%s297_s1 + $0x28] sm:$0xff]  }
   0x3   :  { %225 = vmatprep.subr.bf16.mxu0 %v249_v0  ;;  %v168_v8 = vld [vmem:[%s297_s1 + $0x30] sm:$0xff]   ;;  %v169_v9 = vld [vmem:[%s297_s1 + $0x38] sm:$0xff]   ;;  %v17_v10 = vld [vmem:[%s298_s0] sm:$0xff] }
   0x6   :  { %227 = vmatpush3.bf16.msra.mxu0 %v163_v3 }
   0x7   :  { %228 = vmatprep.subr.bf16.mxu0 %v249_v0 }
   0xa   :  { %230 = vmatpush3.bf16.msra.mxu0 %v164_v4 }
   0xb   :  { %231 = vmatprep.subr.bf16.mxu0 %v249_v0 }
   0xe   :  { %233 = vmatpush3.bf16.msra.mxu0 %v165_v5 }
   0xf   :  { %234 = vmatprep.subr.bf16.mxu0 %v249_v0 }
  0x12   :  { %236 = vmatpush3.bf16.msra.mxu0 %v166_v6 }
  0x13   :  { %237 = vmatprep.subr.bf16.mxu0 %v249_v0 }
  0x16   :  { %239 = vmatpush3.bf16.msra.mxu0 %v167_v7 }
  0x17   :  { %240 = vmatprep.subr.bf16.mxu0 %v249_v0 }
  0x1a   :  { %242 = vmatpush3.bf16.msra.mxu0 %v168_v8 }
  0x1b   :  { %243 = vmatprep.subr.bf16.mxu0 %v249_v0 }
  0x1e   :  { %245 = vmatpush3.bf16.msra.mxu0 %v169_v9 }
  0x21   :  { %220 = vmatmul.mubr.f32.vlgmr.msra.gmra.mrb[0].mxu0 %v17_v10 }
  0xf4   :  { %v116_v11 = vpop.f32.mrb[0].mxu0 }
  0xf5   :  { %126 = vst [vmem:[%s299_s2] sm:$0xff] %v116_v11  ;;  %v221_v12 = vpop.f32.mrb[1].mxu0 }

// kernel: multi_layer_gin.4
= control target key start
LH: loop header
LB: loop body
LE: loop exit
PB: predicated region body
PF: predicated region fallthrough
CT: control target
= control target key end

     0   :  { %s1481_s1 = inlined_call_operand.vmem [shape: bf16[128,128], index: 1, kind: input, shape index: {}]   ;;  %s1482_s0 = inlined_call_operand.vmem [shape: s8[128,128], index: 0, kind: input, shape index: {}]   ;;  %s1483_s2 = inlined_call_operand.vmem [shape: f32[128,128], index: 2, kind: input, shape index: {}]   ;;  %s1484_s4 = inlined_call_operand.vmem [shape: f32[128,128], index: 4, kind: input, shape index: {}]   ;;  %s1485_s3 = inlined_call_operand.vmem [shape: f32[1,128], index: 3, kind: input, shape index: {}]   ;;  %s1486_s5 = inlined_call_operand.vmem [shape: f32[1,128], index: 5, kind: input, shape index: {}]   ;;  %s1487_s6 = inlined_call_operand.vmem [shape: bf16[128,128], index: 6, kind: output, shape index: {}]  }
   0x1   :  { %v817_v0 = vld [vmem:[%s1481_s1] sm:$0xff]   ;;  %v888_v1 = vld [vmem:[%s1481_s1 + $0x8] sm:$0xff]   ;;  %v889_v4 = vld [vmem:[%s1481_s1 + $0x10] sm:$0xff]  }
   0x2   :  { %1167 = vmatprep.subr.bf16.mxu0 %v817_v0  ;;  %v1322_v2 = vld [vmem:[%s1482_s0] sm:$0xff]  ;;  %v890_v6 = vld [vmem:[%s1481_s1 + $0x18] sm:$0xff]   ;;  %v329_v8 = vld [vmem:[%s1483_s2 + $0x8] sm:$0xff] }
   0x3   :  { %1169 = vmatpush3.bf16.msra.mxu0 %v817_v0  ;;  %v47_v3 = vunpack.c.0.s8 %v1322_v2  ;;  %v328_v7 = vld [vmem:[%s1483_s2] sm:$0xff]  ;;  %v330_v9 = vld [vmem:[%s1483_s2 + $0x10] sm:$0xff]  ;;  %v331_v10 = vld [vmem:[%s1483_s2 + $0x18] sm:$0xff]  ;;  %v48_v28 = vunpack.c.1.s8 %v1322_v2  ;;  %v49_v29 = vunpack.c.2.s8 %v1322_v2  ;;  %v50_v35 = vunpack.c.3.s8 %v1322_v2 }
   0x4   :  { %1171 = vmatprep.subr.bf16.mxu0 %v888_v1  ;;  %v1198_v11 = vpack.c.bf16 %v329_v8, %v328_v7  ;;  %v1202_v12 = vpack.c.bf16 %v331_v10, %v330_v9  ;;  %v891_v13 = vld [vmem:[%s1481_s1 + $0x20] sm:$0xff]   ;;  %v333_v15 = vld [vmem:[%s1483_s2 + $0x28] sm:$0xff]  ;;  %v334_v18 = vld [vmem:[%s1483_s2 + $0x30] sm:$0xff] }
   0x5   :  { %v63_v5 = vcvt.s32.f32 %v47_v3  ;;  %v332_v14 = vld [vmem:[%s1483_s2 + $0x20] sm:$0xff]  ;;  %v892_v17 = vld [vmem:[%s1481_s1 + $0x28] sm:$0xff]   ;;  %v335_v19 = vld [vmem:[%s1483_s2 + $0x38] sm:$0xff]  ;;  %v64_v34 = vcvt.s32.f32 %v48_v28  ;;  %v65_v36 = vcvt.s32.f32 %v49_v29  ;;  %v66_v41 = vcvt.s32.f32 %v50_v35 }
   0x6   :  { %1199 = vmatprep.subr.bf16.mxu1 %v1198_v11  ;;  %v1206_v16 = vpack.c.bf16 %v333_v15, %v332_v14  ;;  %v1210_v20 = vpack.c.bf16 %v335_v19, %v334_v18  ;;  %v893_v21 = vld [vmem:[%s1481_s1 + $0x30] sm:$0xff]   ;;  %v336_v22 = vld [vmem:[%s1483_s2 + $0x40] sm:$0xff]  ;;  %v337_v23 = vld [vmem:[%s1483_s2 + $0x48] sm:$0xff] }
   0x7   :  { %1173 = vmatpush3.bf16.msra.mxu0 %v888_v1  ;;  %1030 = vmatprep.mubr.f32.mxu0 %v63_v5  ;;  %v1214_v24 = vpack.c.bf16 %v337_v23, %v336_v22  ;;  %v894_v25 = vld [vmem:[%s1481_s1 + $0x38] sm:$0xff]   ;;  %v338_v26 = vld [vmem:[%s1483_s2 + $0x50] sm:$0xff]  ;;  %v44_v30 = vld [vmem:[%s1482_s0 + $0x8] sm:$0xff] }
   0x8   :  { %1175 = vmatprep.subr.bf16.mxu0 %v889_v4  ;;  %1201 = vmatpush3.bf16.msra.mxu1 %v1198_v11  ;;  %v339_v27 = vld [vmem:[%s1483_s2 + $0x58] sm:$0xff]  ;;  %v340_v32 = vld [vmem:[%s1483_s2 + $0x60] sm:$0xff]  ;;  %v341_v33 = vld [vmem:[%s1483_s2 + $0x68] sm:$0xff]  ;;  %v51_v37 = vunpack.c.0.s8 %v44_v30  ;;  %v52_v42 = vunpack.c.1.s8 %v44_v30  ;;  %v53_v44 = vunpack.c.2.s8 %v44_v30  ;;  %v54_v48 = vunpack.c.3.s8 %v44_v30 }
   0x9   :  { %1203 = vmatprep.subr.bf16.mxu1 %v1202_v12  ;;  %v1218_v31 = vpack.c.bf16 %v339_v27, %v338_v26  ;;  %v1222_v38 = vpack.c.bf16 %v341_v33, %v340_v32  ;;  %v342_v39 = vld [vmem:[%s1483_s2 + $0x70] sm:$0xff]  ;;  %v343_v40 = vld [vmem:[%s1483_s2 + $0x78] sm:$0xff]  ;;  %v513_v5 = vld [vmem:[%s1484_s4 + $0x8] sm:$0xff] }
   0xa   :  { %v67_v43 = vcvt.s32.f32 %v51_v37  ;;  %v45_v45 = vld [vmem:[%s1482_s0 + $0x10] sm:$0xff]  ;;  %v1226_v46 = vpack.c.bf16 %v343_v40, %v342_v39  ;;  %v68_v47 = vcvt.s32.f32 %v52_v42  ;;  %v69_v49 = vcvt.s32.f32 %v53_v44  ;;  %v46_v55 = vld [vmem:[%s1482_s0 + $0x18] sm:$0xff]  ;;  %v516_v10 = vld [vmem:[%s1484_s4 + $0x20] sm:$0xff] }
   0xb   :  { %1177 = vmatpush3.bf16.msra.mxu0 %v889_v4  ;;  %v55_v50 = vunpack.c.0.s8 %v45_v45  ;;  %v70_v51 = vcvt.s32.f32 %v54_v48  ;;  %v56_v52 = vunpack.c.1.s8 %v45_v45  ;;  %v57_v54 = vunpack.c.2.s8 %v45_v45  ;;  %v512_v4 = vld [vmem:[%s1484_s4] sm:$0xff]  ;;  %v515_v8 = vld [vmem:[%s1484_s4 + $0x18] sm:$0xff]  ;;  %v517_v11 = vld [vmem:[%s1484_s4 + $0x28] sm:$0xff] }
   0xc   :  { %1179 = vmatprep.subr.bf16.mxu0 %v890_v6  ;;  %1205 = vmatpush3.bf16.msra.mxu1 %v1202_v12  ;;  %v58_v57 = vunpack.c.3.s8 %v45_v45  ;;  %v59_v59 = vunpack.c.0.s8 %v46_v55  ;;  %v60_v61 = vunpack.c.1.s8 %v46_v55  ;;  %v61_v63 = vunpack.c.2.s8 %v46_v55  ;;  %v519_v14 = vld [vmem:[%s1484_s4 + $0x38] sm:$0xff]  ;;  %v522_v19 = vld [vmem:[%s1484_s4 + $0x50] sm:$0xff]  ;;  %v524_v22 = vld [vmem:[%s1484_s4 + $0x60] sm:$0xff] }
   0xd   :  { %1207 = vmatprep.subr.bf16.mxu1 %v1206_v16  ;;  %v71_v53 = vcvt.s32.f32 %v55_v50  ;;  %v72_v56 = vcvt.s32.f32 %v56_v52  ;;  %v73_v58 = vcvt.s32.f32 %v57_v54  ;;  %v62_v1 = vunpack.c.3.s8 %v46_v55  ;;  %v525_v23 = vld [vmem:[%s1484_s4 + $0x68] sm:$0xff]  ;;  %v527_v42 = vld [vmem:[%s1484_s4 + $0x78] sm:$0xff]  ;;  %v782_v44 = vld [vmem:[%s1485_s3] ss:$0 sm:$0xff] }
   0xe   :  { %v74_v60 = vcvt.s32.f32 %v58_v57  ;;  %v75_v62 = vcvt.s32.f32 %v59_v59  ;;  %v76_v0 = vcvt.s32.f32 %v60_v61  ;;  %v77_v2 = vcvt.s32.f32 %v61_v63 }
   0xf   :  { %1181 = vmatpush3.bf16.msra.mxu0 %v890_v6  ;;  %v78_v3 = vcvt.s32.f32 %v62_v1  ;;  %v514_v6 = vld [vmem:[%s1484_s4 + $0x10] sm:$0xff]  ;;  %v1230_v7 = vpack.c.bf16 %v513_v5, %v512_v4  ;;  %v1238_v12 = vpack.c.bf16 %v517_v11, %v516_v10 }
  0x10   :  { %1183 = vmatprep.subr.bf16.mxu0 %v891_v13  ;;  %1209 = vmatpush3.bf16.msra.mxu1 %v1206_v16  ;;  %v1234_v9 = vpack.c.bf16 %v515_v8, %v514_v6  ;;  %v520_v16 = vld [vmem:[%s1484_s4 + $0x40] sm:$0xff] }
  0x11   :  { %1211 = vmatprep.subr.bf16.mxu1 %v1210_v20 }
  0x13   :  { %1185 = vmatpush3.bf16.msra.mxu0 %v891_v13  ;;  %v518_v13 = vld [vmem:[%s1484_s4 + $0x30] sm:$0xff] }
  0x14   :  { %1187 = vmatprep.subr.bf16.mxu0 %v892_v17  ;;  %1213 = vmatpush3.bf16.msra.mxu1 %v1210_v20  ;;  %v1242_v15 = vpack.c.bf16 %v519_v14, %v518_v13  ;;  %v523_v20 = vld [vmem:[%s1484_s4 + $0x58] sm:$0xff] }
  0x15   :  { %1215 = vmatprep.subr.bf16.mxu1 %v1214_v24 }
  0x17   :  { %1189 = vmatpush3.bf16.msra.mxu0 %v892_v17  ;;  %v521_v17 = vld [vmem:[%s1484_s4 + $0x48] sm:$0xff] }
  0x18   :  { %1191 = vmatprep.subr.bf16.mxu0 %v893_v21  ;;  %1217 = vmatpush3.bf16.msra.mxu1 %v1214_v24  ;;  %v1246_v18 = vpack.c.bf16 %v521_v17, %v520_v16  ;;  %v1254_v24 = vpack.c.bf16 %v525_v23, %v524_v22 }
  0x19   :  { %1219 = vmatprep.subr.bf16.mxu1 %v1218_v31 }
  0x1b   :  { %1193 = vmatpush3.bf16.msra.mxu0 %v893_v21  ;;  %v1250_v21 = vpack.c.bf16 %v523_v20, %v522_v19 }
  0x1c   :  { %1195 = vmatprep.subr.bf16.mxu0 %v894_v25  ;;  %1221 = vmatpush3.bf16.msra.mxu1 %v1218_v31 }
  0x1d   :  { %1223 = vmatprep.subr.bf16.mxu1 %v1222_v38 }
  0x1f   :  { %1197 = vmatpush3.bf16.msra.mxu0 %v894_v25 }
  0x20   :  { %1225 = vmatpush3.bf16.msra.mxu1 %v1222_v38  ;;  %1231 = vmatprep.subr.bf16.mxu0 %v1230_v7 }
  0x21   :  { %1227 = vmatprep.subr.bf16.mxu1 %v1226_v46 }
  0x22   :  { %1031 = vmatmul.mubr.f32.vlgmr.msra.gmra.mrb[0].mxu0 %v64_v34 }
  0x23   :  { %1033 = vmatprep.mubr.f32.mxu0 %v65_v36  ;;  %1233 = vmatpush3.bf16.msra.mxu0 %v1230_v7 }
  0x24   :  { %1229 = vmatpush3.bf16.msra.mxu1 %v1226_v46  ;;  %1235 = vmatprep.subr.bf16.mxu0 %v1234_v9 }
  0x25   :  { %1262 = vmatprep.subr.bf16.mxu1 %v1230_v7 }
  0x26   :  { %1034 = vmatmul.mubr.f32.gmra.mrb[2].mxu0 %v66_v41  ;;  %v526_v41 = vld [vmem:[%s1484_s4 + $0x70] sm:$0xff] }
  0x27   :  { %1036 = vmatprep.mubr.f32.mxu0 %v67_v43  ;;  %1237 = vmatpush3.bf16.msra.mxu0 %v1234_v9  ;;  %v1258_v43 = vpack.c.bf16 %v527_v42, %v526_v41 }
  0x28   :  { %1239 = vmatprep.subr.bf16.mxu0 %v1238_v12 }
  0x2a   :  { %1037 = vmatmul.mubr.f32.gmra.mrb[4].mxu0 %v68_v47 }
  0x2b   :  { %1039 = vmatprep.mubr.f32.mxu0 %v69_v49  ;;  %1241 = vmatpush3.bf16.msra.mxu0 %v1238_v12 }
  0x2c   :  { %1243 = vmatprep.subr.bf16.mxu0 %v1242_v15 }
  0x2e   :  { %1040 = vmatmul.mubr.f32.gmra.mrb[6].mxu0 %v70_v51 }
  0x2f   :  { %1042 = vmatprep.mubr.f32.mxu0 %v71_v53  ;;  %1245 = vmatpush3.bf16.msra.mxu0 %v1242_v15 }
  0x30   :  { %1247 = vmatprep.subr.bf16.mxu0 %v1246_v18 }
  0x32   :  { %1043 = vmatmul.mubr.f32.gmra.mrb[8].mxu0 %v72_v56 }
  0x33   :  { %1045 = vmatprep.mubr.f32.mxu0 %v73_v58  ;;  %1249 = vmatpush3.bf16.msra.mxu0 %v1246_v18 }
  0x34   :  { %1251 = vmatprep.subr.bf16.mxu0 %v1250_v21 }
  0x36   :  { %1046 = vmatmul.mubr.f32.gmra.mrb[10].mxu0 %v74_v60 }
  0x37   :  { %1048 = vmatprep.mubr.f32.mxu0 %v75_v62  ;;  %1253 = vmatpush3.bf16.msra.mxu0 %v1250_v21 }
  0x38   :  { %1255 = vmatprep.subr.bf16.mxu0 %v1254_v24 }
  0x3a   :  { %1049 = vmatmul.mubr.f32.gmra.mrb[12].mxu0 %v76_v0 }
  0x3b   :  { %1051 = vmatprep.mubr.f32.mxu0 %v77_v2  ;;  %1257 = vmatpush3.bf16.msra.mxu0 %v1254_v24 }
  0x3c   :  { %1259 = vmatprep.subr.bf16.mxu0 %v1258_v43 }
  0x3e   :  { %1052 = vmatmul.mubr.f32.gmra.mrb[14].mxu0 %v78_v3 }
  0x3f   :  { %1261 = vmatpush3.bf16.msra.mxu0 %v1258_v43 }
  0xf5   :  { %v1032_v25 = vpop.f32.mrb[0].mxu0 }
  0xf6   :  { %v198_v26 = vpop.f32.mrb[1].mxu0 }
  0xf7   :  { %1086 = vmatprep.mubr.f32.mxu1 %v198_v26 }
  0xf8   :  { %1087 = vmatmul.mubr.f32.vlgmr.msra.gmra.mrb[0].mxu1 %v1032_v25 }
  0xf9   :  { %v1035_v27 = vpop.f32.mrb[2].mxu0  ;;  %1270 = vmatpush3.bf16.msra.mxu1 %v1230_v7 }
  0xfa   :  { %v208_v28 = vpop.f32.mrb[3].mxu0  ;;  %1263 = vmatprep.subr.bf16.mxu1 %v1234_v9 }
  0xfb   :  { %1089 = vmatprep.mubr.f32.mxu1 %v208_v28 }
  0xfc   :  { %1090 = vmatmul.mubr.f32.gmra.mrb[2].mxu1 %v1035_v27 }
  0xfd   :  { %v1038_v29 = vpop.f32.mrb[4].mxu0  ;;  %1271 = vmatpush3.bf16.msra.mxu1 %v1234_v9 }
  0xfe   :  { %v218_v30 = vpop.f32.mrb[5].mxu0  ;;  %1264 = vmatprep.subr.bf16.mxu1 %v1238_v12 }
  0xff   :  { %1092 = vmatprep.mubr.f32.mxu1 %v218_v30 }
 0x100   :  { %1093 = vmatmul.mubr.f32.gmra.mrb[4].mxu1 %v1038_v29  ;;  %v783_v29 = vld [vmem:[%s1486_s5] ss:$0 sm:$0xff] }
 0x101   :  { %v1041_v31 = vpop.f32.mrb[6].mxu0  ;;  %1272 = vmatpush3.bf16.msra.mxu1 %v1238_v12 }
 0x102   :  { %v228_v32 = vpop.f32.mrb[7].mxu0  ;;  %1265 = vmatprep.subr.bf16.mxu1 %v1242_v15 }
 0x103   :  { %1095 = vmatprep.mubr.f32.mxu1 %v228_v32 }
 0x104   :  { %1096 = vmatmul.mubr.f32.gmra.mrb[6].mxu1 %v1041_v31 }
 0x105   :  { %v1044_v33 = vpop.f32.mrb[8].mxu0  ;;  %1273 = vmatpush3.bf16.msra.mxu1 %v1242_v15 }
 0x106   :  { %v238_v34 = vpop.f32.mrb[9].mxu0  ;;  %1266 = vmatprep.subr.bf16.mxu1 %v1246_v18 }
 0x107   :  { %1098 = vmatprep.mubr.f32.mxu1 %v238_v34 }
 0x108   :  { %1099 = vmatmul.mubr.f32.gmra.mrb[8].mxu1 %v1044_v33 }
 0x109   :  { %v1047_v35 = vpop.f32.mrb[10].mxu0  ;;  %1274 = vmatpush3.bf16.msra.mxu1 %v1246_v18 }
 0x10a   :  { %v248_v36 = vpop.f32.mrb[11].mxu0  ;;  %1267 = vmatprep.subr.bf16.mxu1 %v1250_v21 }
 0x10b   :  { %1101 = vmatprep.mubr.f32.mxu1 %v248_v36 }
 0x10c   :  { %1102 = vmatmul.mubr.f32.gmra.mrb[10].mxu1 %v1047_v35 }
 0x10d   :  { %v1050_v37 = vpop.f32.mrb[12].mxu0  ;;  %1275 = vmatpush3.bf16.msra.mxu1 %v1250_v21 }
 0x10e   :  { %v258_v38 = vpop.f32.mrb[13].mxu0  ;;  %1268 = vmatprep.subr.bf16.mxu1 %v1254_v24 }
 0x10f   :  { %1104 = vmatprep.mubr.f32.mxu1 %v258_v38 }
 0x110   :  { %1105 = vmatmul.mubr.f32.gmra.mrb[12].mxu1 %v1050_v37 }
 0x111   :  { %v1053_v39 = vpop.f32.mrb[14].mxu0  ;;  %1276 = vmatpush3.bf16.msra.mxu1 %v1254_v24 }
 0x112   :  { %v268_v40 = vpop.f32.mrb[15].mxu0  ;;  %1269 = vmatprep.subr.bf16.mxu1 %v1258_v43 }
 0x113   :  { %1107 = vmatprep.mubr.f32.mxu1 %v268_v40 }
 0x114   :  { %1108 = vmatmul.mubr.f32.gmra.mrb[14].mxu1 %v1053_v39 }
 0x115   :  { %1277 = vmatpush3.bf16.msra.mxu1 %v1258_v43 }
 0x1cb   :  { %v1088_v45 = vpop.f32.mrb[0].mxu1 }
 0x1cc   :  { %v423_v46 = vadd.f32 %v1088_v45, %v782_v44  ;;  %v417_v47 = vpop.f32.mrb[1].mxu1 }
 0x1cd   :  { %v418_v48 = vadd.f32 %v782_v44, %v417_v47 }
 0x1ce   :  { %v497_v51 = vmax.f32 %v423_v46, 0.0 }
 0x1cf   :  { %v496_v49 = vmax.f32 %v418_v48, 0.0  ;;  %v1091_v50 = vpop.f32.mrb[2].mxu1 }
 0x1d0   :  { %v433_v52 = vadd.f32 %v1091_v50, %v782_v44  ;;  %v427_v53 = vpop.f32.mrb[3].mxu1 }
 0x1d1   :  { %v428_v54 = vadd.f32 %v782_v44, %v427_v53  ;;  %1142 = vmatprep.mubr.f32.mxu0 %v496_v49 }
 0x1d2   :  { %1143 = vmatmul.mubr.f32.vlgmr.msra.gmra.mrb[16].mxu0 %v497_v51  ;;  %v499_v57 = vmax.f32 %v433_v52, 0.0 }
 0x1d3   :  { %v498_v55 = vmax.f32 %v428_v54, 0.0  ;;  %v1094_v56 = vpop.f32.mrb[4].mxu1 }
 0x1d4   :  { %v443_v58 = vadd.f32 %v1094_v56, %v782_v44  ;;  %v437_v59 = vpop.f32.mrb[5].mxu1 }
 0x1d5   :  { %v438_v60 = vadd.f32 %v782_v44, %v437_v59  ;;  %1145 = vmatprep.mubr.f32.mxu0 %v498_v55 }
 0x1d6   :  { %1146 = vmatmul.mubr.f32.gmra.mrb[18].mxu0 %v499_v57  ;;  %v501_v63 = vmax.f32 %v443_v58, 0.0 }
 0x1d7   :  { %v500_v61 = vmax.f32 %v438_v60, 0.0  ;;  %v1097_v62 = vpop.f32.mrb[6].mxu1 }
 0x1d8   :  { %v453_v0 = vadd.f32 %v1097_v62, %v782_v44  ;;  %v447_v1 = vpop.f32.mrb[7].mxu1 }
 0x1d9   :  { %v448_v2 = vadd.f32 %v782_v44, %v447_v1  ;;  %1148 = vmatprep.mubr.f32.mxu0 %v500_v61 }
 0x1da   :  { %1149 = vmatmul.mubr.f32.gmra.mrb[20].mxu0 %v501_v63  ;;  %v503_v5 = vmax.f32 %v453_v0, 0.0 }
 0x1db   :  { %v502_v3 = vmax.f32 %v448_v2, 0.0  ;;  %v1100_v4 = vpop.f32.mrb[8].mxu1 }
 0x1dc   :  { %v463_v6 = vadd.f32 %v1100_v4, %v782_v44  ;;  %v457_v7 = vpop.f32.mrb[9].mxu1 }
 0x1dd   :  { %v458_v8 = vadd.f32 %v782_v44, %v457_v7  ;;  %1151 = vmatprep.mubr.f32.mxu0 %v502_v3 }
 0x1de   :  { %1152 = vmatmul.mubr.f32.gmra.mrb[22].mxu0 %v503_v5  ;;  %v505_v11 = vmax.f32 %v463_v6, 0.0 }
 0x1df   :  { %v504_v9 = vmax.f32 %v458_v8, 0.0  ;;  %v1103_v10 = vpop.f32.mrb[10].mxu1 }
 0x1e0   :  { %v473_v12 = vadd.f32 %v1103_v10, %v782_v44  ;;  %v467_v13 = vpop.f32.mrb[11].mxu1 }
 0x1e1   :  { %v468_v14 = vadd.f32 %v782_v44, %v467_v13  ;;  %1154 = vmatprep.mubr.f32.mxu1 %v504_v9 }
 0x1e2   :  { %1155 = vmatmul.mubr.f32.vlgmr.msra.gmra.mrb[16].mxu1 %v505_v11  ;;  %v507_v17 = vmax.f32 %v473_v12, 0.0 }
 0x1e3   :  { %v506_v15 = vmax.f32 %v468_v14, 0.0  ;;  %v1106_v16 = vpop.f32.mrb[12].mxu1 }
 0x1e4   :  { %v483_v18 = vadd.f32 %v1106_v16, %v782_v44  ;;  %v477_v19 = vpop.f32.mrb[13].mxu1 }
 0x1e5   :  { %v478_v20 = vadd.f32 %v782_v44, %v477_v19  ;;  %1157 = vmatprep.mubr.f32.mxu1 %v506_v15 }
 0x1e6   :  { %1158 = vmatmul.mubr.f32.gmra.mrb[18].mxu1 %v507_v17  ;;  %v509_v23 = vmax.f32 %v483_v18, 0.0 }
 0x1e7   :  { %v508_v21 = vmax.f32 %v478_v20, 0.0  ;;  %v1109_v22 = vpop.f32.mrb[14].mxu1 }
 0x1e8   :  { %v493_v24 = vadd.f32 %v1109_v22, %v782_v44  ;;  %v487_v25 = vpop.f32.mrb[15].mxu1 }
 0x1e9   :  { %v488_v26 = vadd.f32 %v782_v44, %v487_v25  ;;  %1160 = vmatprep.mubr.f32.mxu1 %v508_v21 }
 0x1ea   :  { %1161 = vmatmul.mubr.f32.gmra.mrb[20].mxu1 %v509_v23  ;;  %v511_v28 = vmax.f32 %v493_v24, 0.0 }
 0x1eb   :  { %v510_v27 = vmax.f32 %v488_v26, 0.0 }
 0x1ed   :  { %1163 = vmatprep.mubr.f32.mxu1 %v510_v27 }
 0x1ee   :  { %1164 = vmatmul.mubr.f32.gmra.mrb[22].mxu1 %v511_v28 }
 0x2a5   :  { %v1144_v30 = vpop.f32.mrb[16].mxu0 }
 0x2a6   :  { %v607_v31 = vadd.f32 %v1144_v30, %v783_v29  ;;  %v601_v32 = vpop.f32.mrb[17].mxu0 }
 0x2a7   :  { %v602_v33 = vadd.f32 %v783_v29, %v601_v32 }
 0x2a8   :  { %v681_v34 = vmax.f32 %v607_v31, 0.0 }
 0x2a9   :  { %v680_v35 = vmax.f32 %v602_v33, 0.0  ;;  %v1147_v36 = vpop.f32.mrb[18].mxu0 }
 0x2aa   :  { %v617_v37 = vadd.f32 %v1147_v36, %v783_v29  ;;  %v611_v38 = vpop.f32.mrb[19].mxu0 }
 0x2ab   :  { %v851_v39 = vpack.c.bf16 %v681_v34, %v680_v35  ;;  %v612_v40 = vadd.f32 %v783_v29, %v611_v38 }
 0x2ac   :  { %v683_v41 = vmax.f32 %v617_v37, 0.0 }
 0x2ad   :  { %852 = vst [vmem:[%s1487_s6] sm:$0xff] %v851_v39   ;;  %v682_v42 = vmax.f32 %v612_v40, 0.0  ;;  %v1150_v43 = vpop.f32.mrb[20].mxu0 }
 0x2ae   :  { %v627_v44 = vadd.f32 %v1150_v43, %v783_v29  ;;  %v621_v45 = vpop.f32.mrb[21].mxu0 }
 0x2af   :  { %v856_v46 = vpack.c.bf16 %v683_v41, %v682_v42  ;;  %v622_v47 = vadd.f32 %v783_v29, %v621_v45 }
 0x2b0   :  { %v685_v48 = vmax.f32 %v627_v44, 0.0 }
 0x2b1   :  { %895 = vst [vmem:[%s1487_s6 + $0x8] sm:$0xff] %v856_v46   ;;  %v684_v49 = vmax.f32 %v622_v47, 0.0  ;;  %v1153_v50 = vpop.f32.mrb[22].mxu0 }
 0x2b2   :  { %v637_v51 = vadd.f32 %v1153_v50, %v783_v29  ;;  %v631_v52 = vpop.f32.mrb[23].mxu0 }
 0x2b3   :  { %v861_v53 = vpack.c.bf16 %v685_v48, %v684_v49  ;;  %v632_v54 = vadd.f32 %v783_v29, %v631_v52 }
 0x2b4   :  { %v687_v55 = vmax.f32 %v637_v51, 0.0 }
 0x2b5   :  { %896 = vst [vmem:[%s1487_s6 + $0x10] sm:$0xff] %v861_v53   ;;  %v686_v56 = vmax.f32 %v632_v54, 0.0  ;;  %v1156_v57 = vpop.f32.mrb[16].mxu1 }
 0x2b6   :  { %v647_v58 = vadd.f32 %v1156_v57, %v783_v29  ;;  %v641_v59 = vpop.f32.mrb[17].mxu1 }
 0x2b7   :  { %v866_v60 = vpack.c.bf16 %v687_v55, %v686_v56  ;;  %v642_v61 = vadd.f32 %v783_v29, %v641_v59 }
 0x2b8   :  { %v689_v62 = vmax.f32 %v647_v58, 0.0 }
 0x2b9   :  { %897 = vst [vmem:[%s1487_s6 + $0x18] sm:$0xff] %v866_v60   ;;  %v688_v63 = vmax.f32 %v642_v61, 0.0  ;;  %v1159_v0 = vpop.f32.mrb[18].mxu1 }
 0x2ba   :  { %v657_v1 = vadd.f32 %v1159_v0, %v783_v29  ;;  %v651_v2 = vpop.f32.mrb[19].mxu1 }
 0x2bb   :  { %v871_v3 = vpack.c.bf16 %v689_v62, %v688_v63  ;;  %v652_v4 = vadd.f32 %v783_v29, %v651_v2 }
 0x2bc   :  { %v691_v5 = vmax.f32 %v657_v1, 0.0 }
 0x2bd   :  { %898 = vst [vmem:[%s1487_s6 + $0x20] sm:$0xff] %v871_v3   ;;  %v690_v6 = vmax.f32 %v652_v4, 0.0  ;;  %v1162_v7 = vpop.f32.mrb[20].mxu1 }
 0x2be   :  { %v667_v8 = vadd.f32 %v1162_v7, %v783_v29  ;;  %v661_v9 = vpop.f32.mrb[21].mxu1 }
 0x2bf   :  { %v876_v10 = vpack.c.bf16 %v691_v5, %v690_v6  ;;  %v662_v11 = vadd.f32 %v783_v29, %v661_v9 }
 0x2c0   :  { %v693_v12 = vmax.f32 %v667_v8, 0.0 }
 0x2c1   :  { %899 = vst [vmem:[%s1487_s6 + $0x28] sm:$0xff] %v876_v10   ;;  %v692_v13 = vmax.f32 %v662_v11, 0.0  ;;  %v1165_v14 = vpop.f32.mrb[22].mxu1 }
 0x2c2   :  { %v677_v15 = vadd.f32 %v1165_v14, %v783_v29  ;;  %v671_v16 = vpop.f32.mrb[23].mxu1 }
 0x2c3   :  { %v881_v17 = vpack.c.bf16 %v693_v12, %v692_v13  ;;  %v672_v18 = vadd.f32 %v783_v29, %v671_v16 }
 0x2c4   :  { %v695_v19 = vmax.f32 %v677_v15, 0.0 }
 0x2c5   :  { %900 = vst [vmem:[%s1487_s6 + $0x30] sm:$0xff] %v881_v17   ;;  %v694_v20 = vmax.f32 %v672_v18, 0.0 }
 0x2c7   :  { %v886_v21 = vpack.c.bf16 %v695_v19, %v694_v20 }
 0x2c9   :  { %901 = vst [vmem:[%s1487_s6 + $0x38] sm:$0xff] %v886_v21  }

</bundles_post_ra>
